<compile_context>
chip_gen: v7x
topology: tpu7x:2x2x1
jax: 0.10.0
libtpu: 0.0.40
codegen_flags: <defaults>
</compile_context>

<pallas_src>
import functools
import math

import jax
import jax.numpy as jnp
from jax.experimental import pallas as pl
from jax.experimental.pallas import tpu as pltpu


# Large finite negative instead of -inf so fully-masked rows / first-tile
# corrections never produce (-inf) - (-inf) = NaN.
_MASK_VALUE = -1e30


def _pick_tile(n: int, cap: int) -> int:
    """Largest divisor of n that is <= cap and sublane friendly (mult of 8)."""
    for t in range(min(n, cap), 0, -1):
        if n % t == 0 and (t % 8 == 0 or t == n):
            return t
    return n


def _vmem_limit(footprint_bytes: int) -> int:
    """Scoped-VMEM limit derived from the actual block+scratch footprint."""
    return int(min(64 * 1024 * 1024, max(16 * 1024 * 1024, 2 * footprint_bytes)))


# --------------------------------------------------------------------------
# Kernel 1: fused Q/K/V projections, written head-major (B, H, S, d_k).
# --------------------------------------------------------------------------
def _qkv_proj_kernel(xq_ref, xk_ref, xv_ref, wq_ref, wk_ref, wv_ref,
                     qp_ref, kp_ref, vp_ref, *, scale):
    xq = xq_ref[0]                       # (ts, D)
    xk = xk_ref[0]
    xv = xv_ref[0]
    wq = wq_ref[0]                       # (D, d_k)  -- current head's slab
    wk = wk_ref[0]
    wv = wv_ref[0]

    qp = jnp.dot(xq, wq, preferred_element_type=jnp.float32) * scale
    kp = jnp.dot(xk, wk, preferred_element_type=jnp.float32)
    vp = jnp.dot(xv, wv, preferred_element_type=jnp.float32)

    qp_ref[0, 0] = qp.astype(qp_ref.dtype)
    kp_ref[0, 0] = kp.astype(kp_ref.dtype)
    vp_ref[0, 0] = vp.astype(vp_ref.dtype)


def _qkv_project(q, k, v, wqh, wkh, wvh, *, scale):
    B, S, D = q.shape
    H, _, dk = wqh.shape
    ts = _pick_tile(S, 256)
    ns = S // ts

    x_spec = pl.BlockSpec((1, ts, D), lambda b, s, h: (b, s, 0))
    w_spec = pl.BlockSpec((1, D, dk), lambda b, s, h: (h, 0, 0))
    o_spec = pl.BlockSpec((1, 1, ts, dk), lambda b, s, h: (b, h, s, 0))

    isz = q.dtype.itemsize
    footprint = 2 * (3 * ts * D * isz + 3 * D * dk * isz + 3 * ts * dk * isz)

    out_sds = jax.ShapeDtypeStruct((B, H, S, dk), q.dtype)
    return pl.pallas_call(
        functools.partial(_qkv_proj_kernel, scale=scale),
        out_shape=(out_sds, out_sds, out_sds),
        grid_spec=pltpu.PrefetchScalarGridSpec(
            num_scalar_prefetch=0,
            grid=(B, ns, H),
            in_specs=[x_spec, x_spec, x_spec, w_spec, w_spec, w_spec],
            out_specs=[o_spec, o_spec, o_spec],
        ),
        compiler_params=pltpu.CompilerParams(
            # Every grid point writes a distinct output block -> no carried
            # state; all axes can be sharded across cores.
            dimension_semantics=("parallel", "parallel", "parallel"),
            vmem_limit_bytes=_vmem_limit(footprint)),
    )(q, k, v, wqh, wkh, wvh)


# --------------------------------------------------------------------------
# Kernel 2: flash attention over kv tiles + fused output projection.
# --------------------------------------------------------------------------
def _flash_mha_kernel(qp_ref, kp_ref, vp_ref, woh_ref, o_ref,
                      m_sc, l_sc, acc_sc, *, tq, tk, num_heads, causal):
    qi = pl.program_id(1)
    ki = pl.program_id(2)
    nk = pl.num_programs(2)

    @pl.when(ki == 0)
    def _init():
        m_sc[...] = jnp.full(m_sc.shape, _MASK_VALUE, dtype=m_sc.dtype)
        l_sc[...] = jnp.zeros(l_sc.shape, dtype=l_sc.dtype)
        acc_sc[...] = jnp.zeros(acc_sc.shape, dtype=acc_sc.dtype)

    def _update(apply_mask):
        q = qp_ref[0]                    # (H, tq, d_k) -- 1/sqrt(d_k) folded in
        k = kp_ref[0]                    # (H, tk, d_k)
        v = vp_ref[0]                    # (H, tk, d_k)

        # Batched over heads: single dot_general, no per-head lane slicing.
        s = jnp.einsum("hqd,hkd->hqk", q, k,
                       preferred_element_type=jnp.float32)          # (H,tq,tk)
        if apply_mask:
            row = qi * tq + jax.lax.broadcasted_iota(jnp.int32, (tq, tk), 0)
            col = ki * tk + jax.lax.broadcasted_iota(jnp.int32, (tq, tk), 1)
            s = jnp.where((row >= col)[None, :, :], s, _MASK_VALUE)

        m_prev = m_sc[...]                                           # (H,tq,1)
        m_new = jnp.maximum(m_prev, jnp.max(s, axis=-1, keepdims=True))
        alpha = jnp.exp(m_prev - m_new)                              # EUP
        p = jnp.exp(s - m_new)
        l_sc[...] = alpha * l_sc[...] + jnp.sum(p, axis=-1, keepdims=True)
        acc_sc[...] = alpha * acc_sc[...] + jnp.einsum(
            "hqk,hkd->hqd", p.astype(v.dtype), v,
            preferred_element_type=jnp.float32)                      # (H,tq,dk)
        m_sc[...] = m_new

    if causal:
        q_start = qi * tq
        q_end = q_start + (tq - 1)
        k_start = ki * tk
        k_end = k_start + (tk - 1)
        not_skipped = k_start <= q_end        # tile has >= 1 allowed element
        needs_mask = k_end > q_start          # tile straddles the diagonal

        @pl.when(not_skipped & jnp.logical_not(needs_mask))
        def _full_tile():
            _update(apply_mask=False)

        @pl.when(not_skipped & needs_mask)
        def _diag_tile():
            _update(apply_mask=True)
    else:
        _update(apply_mask=False)

    @pl.when(ki == nk - 1)
    def _finalize():
        inv_l = pl.reciprocal(l_sc[...], approx=True)    # EUP slot, ~free
        attn = acc_sc[...] * inv_l                       # (H, tq, d_k)
        # Fused output projection: out = sum_h attn[h] @ Wo[h]; runs once per
        # q tile, heads indexed on the leading (sublane-major) dim so no lane
        # relayout is required.  H is a static Python int -> unrolled MXU dots.
        out = jnp.zeros(o_ref.shape[1:], dtype=jnp.float32)          # (tq, D)
        for h in range(num_heads):
            out = out + jnp.dot(attn[h].astype(woh_ref.dtype), woh_ref[h],
                                preferred_element_type=jnp.float32)
        o_ref[0] = out.astype(o_ref.dtype)


def _flash_attention(qp, kp, vp, woh, *, causal):
    B, H, S, dk = qp.shape
    D = woh.shape[-1]
    tq = _pick_tile(S, 128)
    tk = _pick_tile(S, 128)
    nq, nk = S // tq, S // tk

    q_spec = pl.BlockSpec((1, H, tq, dk), lambda b, i, j: (b, 0, i, 0))
    kv_spec = pl.BlockSpec((1, H, tk, dk), lambda b, i, j: (b, 0, j, 0))
    # Constant index map -> the Wo slab is fetched once and revisited.  (For
    # very large D, pass it via memory_space=pl.ANY + one manual copy to avoid
    # the second pipeline buffer.)
    w_spec = pl.BlockSpec((H, dk, D), lambda b, i, j: (0, 0, 0))
    o_spec = pl.BlockSpec((1, tq, D), lambda b, i, j: (b, i, 0))

    isz = qp.dtype.itemsize
    footprint = (2 * H * tq * dk * isz            # q blocks (double buffered)
                 + 2 * 2 * H * tk * dk * isz      # k + v blocks
                 + 2 * H * dk * D * isz           # output-projection weight
                 + 2 * tq * D * isz               # output block
                 + 4 * (2 * H * tq + H * tq * dk))  # f32 scratch m, l, acc

    kernel = functools.partial(_flash_mha_kernel, tq=tq, tk=tk,
                               num_heads=H, causal=causal)
    return pl.pallas_call(
        kernel,
        out_shape=jax.ShapeDtypeStruct((B, S, D), qp.dtype),
        grid_spec=pltpu.PrefetchScalarGridSpec(
            num_scalar_prefetch=0,
            grid=(B, nq, nk),
            in_specs=[q_spec, kv_spec, kv_spec, w_spec],
            out_specs=o_spec,
            scratch_shapes=[pltpu.VMEM((H, tq, 1), jnp.float32),   # m
                            pltpu.VMEM((H, tq, 1), jnp.float32),   # l
                            pltpu.VMEM((H, tq, dk), jnp.float32)], # acc
        ),
        compiler_params=pltpu.CompilerParams(
            dimension_semantics=("parallel", "parallel", "arbitrary"),
            vmem_limit_bytes=_vmem_limit(footprint)),
    )(qp, kp, vp, woh)


# --------------------------------------------------------------------------
# Public wrapper (weights pre-transposed to (in, out) so y = x @ W matches
# PyTorch's x @ W.T with W stored as (out, in)).
# --------------------------------------------------------------------------
def multi_head_attention(q, k, v, wq, wk, wv, wo, *, num_heads: int,
                         use_causal_mask: bool = False):
    """q,k,v: (B, S, D); wq/wk/wv: (D, D); wo: (D, D) -- all (in, out)."""
    B, S, D = q.shape
    assert D % num_heads == 0, "d_model must be divisible by num_heads"
    dk = D // num_heads

    # One-time host/XLA-side weight rearrangement into head-major layout.
    wqh = wq.reshape(D, num_heads, dk).transpose(1, 0, 2)   # (H, D, d_k)
    wkh = wk.reshape(D, num_heads, dk).transpose(1, 0, 2)
    wvh = wv.reshape(D, num_heads, dk).transpose(1, 0, 2)
    woh = wo.reshape(num_heads, dk, D)                      # (H, d_k, D)

    scale = 1.0 / math.sqrt(dk)
    qp, kp, vp = _qkv_project(q, k, v, wqh, wkh, wvh, scale=scale)
    return _flash_attention(qp, kp, vp, woh, causal=use_causal_mask)


# --------------------------------------------------------------------------
# Pure-JAX reference
# --------------------------------------------------------------------------
def _reference(q, k, v, wq, wk, wv, wo, num_heads, use_causal_mask):
    B, S, D = q.shape
    d_k = D // num_heads
    qp = (q @ wq).reshape(B, S, num_heads, d_k).transpose(0, 2, 1, 3)
    kp = (k @ wk).reshape(B, S, num_heads, d_k).transpose(0, 2, 1, 3)
    vp = (v @ wv).reshape(B, S, num_heads, d_k).transpose(0, 2, 1, 3)
    scores = jnp.einsum("bhqd,bhkd->bhqk", qp, kp) / (d_k ** 0.5)
    if use_causal_mask:
        row = jnp.arange(S)[:, None]
        col = jnp.arange(S)[None, :]
        scores = jnp.where(row >= col, scores, -jnp.inf)
    p = jax.nn.softmax(scores, axis=-1)
    out = jnp.einsum("bhqk,bhkd->bhqd", p, vp)
    out = out.transpose(0, 2, 1, 3).reshape(B, S, D)
    return out @ wo


if __name__ == "__main__":
    B, S, d_model, num_heads = 2, 8, 32, 4

    key = jax.random.PRNGKey(0)
    kq, kk, kv, kwq, kwk, kwv, kwo = jax.random.split(key, 7)

    q = jax.random.normal(kq, (B, S, d_model), dtype=jnp.float32)
    k = jax.random.normal(kk, (B, S, d_model), dtype=jnp.float32)
    v = jax.random.normal(kv, (B, S, d_model), dtype=jnp.float32)

    # Synthetic weights, already transposed to (in, out).
    wscale = 1.0 / (d_model ** 0.5)
    wq = jax.random.uniform(kwq, (d_model, d_model), jnp.float32, -wscale, wscale)
    wk = jax.random.uniform(kwk, (d_model, d_model), jnp.float32, -wscale, wscale)
    wv = jax.random.uniform(kwv, (d_model, d_model), jnp.float32, -wscale, wscale)
    wo = jax.random.uniform(kwo, (d_model, d_model), jnp.float32, -wscale, wscale)

    for causal in (False, True):
        out = multi_head_attention(q, k, v, wq, wk, wv, wo,
                                   num_heads=num_heads,
                                   use_causal_mask=causal)
        out = jax.block_until_ready(out)
        ref = _reference(q, k, v, wq, wk, wv, wo, num_heads, causal)
        assert out.shape == (B, S, d_model)
        # Tolerance accounts for the approximate EUP reciprocal used in the
        # softmax normalization (pl.reciprocal(..., approx=True)).
        assert jnp.allclose(out, ref, atol=1e-2, rtol=1e-2), (
            f"mismatch (causal={causal}), "
            f"max_abs_err={jnp.max(jnp.abs(out - ref))}")

    print("KERNEL_OK")
</pallas_src>

<mosaic_0001>
module attributes {stable_mosaic.version = 11 : i64} {
  func.func @_qkv_proj_kernel(%arg0: i32, %arg1: i32, %arg2: i32, %arg3: memref<1x8x32xf32, #tpu.memory_space<vmem>>, %arg4: memref<1x8x32xf32, #tpu.memory_space<vmem>>, %arg5: memref<1x8x32xf32, #tpu.memory_space<vmem>>, %arg6: memref<1x32x8xf32, #tpu.memory_space<vmem>>, %arg7: memref<1x32x8xf32, #tpu.memory_space<vmem>>, %arg8: memref<1x32x8xf32, #tpu.memory_space<vmem>>, %arg9: memref<1x1x8x8xf32, #tpu.memory_space<vmem>>, %arg10: memref<1x1x8x8xf32, #tpu.memory_space<vmem>>, %arg11: memref<1x1x8x8xf32, #tpu.memory_space<vmem>>) attributes {dimension_semantics = [#tpu.dimension_semantics<parallel>, #tpu.dimension_semantics<parallel>, #tpu.dimension_semantics<parallel>], iteration_bounds = array<i64: 2, 1, 4>, scalar_prefetch = 0 : i64, scratch_operands = 0 : i64, tpu.core_type = #tpu.core_type<tc>, window_params = [{transform_indices = @transform_0, window_bounds = array<i64: 1, 8, 32>}, {transform_indices = @transform_1, window_bounds = array<i64: 1, 8, 32>}, {transform_indices = @transform_2, window_bounds = array<i64: 1, 8, 32>}, {transform_indices = @transform_3, window_bounds = array<i64: 1, 32, 8>}, {transform_indices = @transform_4, window_bounds = array<i64: 1, 32, 8>}, {transform_indices = @transform_5, window_bounds = array<i64: 1, 32, 8>}, {transform_indices = @transform_6, window_bounds = array<i64: 1, 1, 8, 8>}, {transform_indices = @transform_7, window_bounds = array<i64: 1, 1, 8, 8>}, {transform_indices = @transform_8, window_bounds = array<i64: 1, 1, 8, 8>}]} {
    %c0 = arith.constant 0 : index
    %c0_0 = arith.constant 0 : index
    %c0_1 = arith.constant 0 : index
    %0 = vector.load %arg3[%c0, %c0_0, %c0_1] : memref<1x8x32xf32, #tpu.memory_space<vmem>>, vector<1x8x32xf32>
    %1 = vector.shape_cast %0 : vector<1x8x32xf32> to vector<8x32xf32>
    %c0_2 = arith.constant 0 : index
    %c0_3 = arith.constant 0 : index
    %c0_4 = arith.constant 0 : index
    %2 = vector.load %arg4[%c0_2, %c0_3, %c0_4] : memref<1x8x32xf32, #tpu.memory_space<vmem>>, vector<1x8x32xf32>
    %3 = vector.shape_cast %2 : vector<1x8x32xf32> to vector<8x32xf32>
    %c0_5 = arith.constant 0 : index
    %c0_6 = arith.constant 0 : index
    %c0_7 = arith.constant 0 : index
    %4 = vector.load %arg5[%c0_5, %c0_6, %c0_7] : memref<1x8x32xf32, #tpu.memory_space<vmem>>, vector<1x8x32xf32>
    %5 = vector.shape_cast %4 : vector<1x8x32xf32> to vector<8x32xf32>
    %c0_8 = arith.constant 0 : index
    %c0_9 = arith.constant 0 : index
    %c0_10 = arith.constant 0 : index
    %6 = vector.load %arg6[%c0_8, %c0_9, %c0_10] : memref<1x32x8xf32, #tpu.memory_space<vmem>>, vector<1x32x8xf32>
    %7 = vector.shape_cast %6 : vector<1x32x8xf32> to vector<32x8xf32>
    %c0_11 = arith.constant 0 : index
    %c0_12 = arith.constant 0 : index
    %c0_13 = arith.constant 0 : index
    %8 = vector.load %arg7[%c0_11, %c0_12, %c0_13] : memref<1x32x8xf32, #tpu.memory_space<vmem>>, vector<1x32x8xf32>
    %9 = vector.shape_cast %8 : vector<1x32x8xf32> to vector<32x8xf32>
    %c0_14 = arith.constant 0 : index
    %c0_15 = arith.constant 0 : index
    %c0_16 = arith.constant 0 : index
    %10 = vector.load %arg8[%c0_14, %c0_15, %c0_16] : memref<1x32x8xf32, #tpu.memory_space<vmem>>, vector<1x32x8xf32>
    %11 = vector.shape_cast %10 : vector<1x32x8xf32> to vector<32x8xf32>
    %cst = arith.constant dense<0.000000e+00> : vector<8x8xf32>
    %12 = tpu.matmul %1, %7, %cst {dimension_numbers = #tpu.dot_dimension_numbers<[1], [0], [0], [1], [0, 0, 1, 1], [], []>} : vector<8x32xf32>, vector<32x8xf32>, vector<8x8xf32> -> vector<8x8xf32>
    %cst_17 = arith.constant 0.353553385 : f32
    %13 = vector.broadcast %cst_17 : f32 to vector<8x8xf32>
    %14 = arith.mulf %12, %13 : vector<8x8xf32>
    %cst_18 = arith.constant dense<0.000000e+00> : vector<8x8xf32>
    %15 = tpu.matmul %3, %9, %cst_18 {dimension_numbers = #tpu.dot_dimension_numbers<[1], [0], [0], [1], [0, 0, 1, 1], [], []>} : vector<8x32xf32>, vector<32x8xf32>, vector<8x8xf32> -> vector<8x8xf32>
    %cst_19 = arith.constant dense<0.000000e+00> : vector<8x8xf32>
    %16 = tpu.matmul %5, %11, %cst_19 {dimension_numbers = #tpu.dot_dimension_numbers<[1], [0], [0], [1], [0, 0, 1, 1], [], []>} : vector<8x32xf32>, vector<32x8xf32>, vector<8x8xf32> -> vector<8x8xf32>
    %c0_20 = arith.constant 0 : index
    %c0_21 = arith.constant 0 : index
    %c0_22 = arith.constant 0 : index
    %c0_23 = arith.constant 0 : index
    %17 = vector.load %arg9[%c0_20, %c0_21, %c0_22, %c0_23] : memref<1x1x8x8xf32, #tpu.memory_space<vmem>>, vector<1x1x8x8xf32>
    %18 = vector.shape_cast %17 : vector<1x1x8x8xf32> to vector<8x8xf32>
    %19 = vector.shape_cast %14 : vector<8x8xf32> to vector<1x1x8x8xf32>
    tpu.vector_store %arg9[%c0_20, %c0_21, %c0_22, %c0_23], %19 {strides = array<i32>} : memref<1x1x8x8xf32, #tpu.memory_space<vmem>>, vector<1x1x8x8xf32>,
    %c0_24 = arith.constant 0 : index
    %c0_25 = arith.constant 0 : index
    %c0_26 = arith.constant 0 : index
    %c0_27 = arith.constant 0 : index
    %20 = vector.load %arg10[%c0_24, %c0_25, %c0_26, %c0_27] : memref<1x1x8x8xf32, #tpu.memory_space<vmem>>, vector<1x1x8x8xf32>
    %21 = vector.shape_cast %20 : vector<1x1x8x8xf32> to vector<8x8xf32>
    %22 = vector.shape_cast %15 : vector<8x8xf32> to vector<1x1x8x8xf32>
    tpu.vector_store %arg10[%c0_24, %c0_25, %c0_26, %c0_27], %22 {strides = array<i32>} : memref<1x1x8x8xf32, #tpu.memory_space<vmem>>, vector<1x1x8x8xf32>,
    %c0_28 = arith.constant 0 : index
    %c0_29 = arith.constant 0 : index
    %c0_30 = arith.constant 0 : index
    %c0_31 = arith.constant 0 : index
    %23 = vector.load %arg11[%c0_28, %c0_29, %c0_30, %c0_31] : memref<1x1x8x8xf32, #tpu.memory_space<vmem>>, vector<1x1x8x8xf32>
    %24 = vector.shape_cast %23 : vector<1x1x8x8xf32> to vector<8x8xf32>
    %25 = vector.shape_cast %16 : vector<8x8xf32> to vector<1x1x8x8xf32>
    tpu.vector_store %arg11[%c0_28, %c0_29, %c0_30, %c0_31], %25 {strides = array<i32>} : memref<1x1x8x8xf32, #tpu.memory_space<vmem>>, vector<1x1x8x8xf32>,
    return
  }
  func.func @transform_0(%arg0: i32, %arg1: i32, %arg2: i32) -> (i32, i32, i32) {
    %c0_i32 = arith.constant 0 : i32
    %c0_i32_0 = arith.constant 0 : i32
    return %arg0, %arg1, %c0_i32 : i32, i32, i32
  }
  func.func @transform_1(%arg0: i32, %arg1: i32, %arg2: i32) -> (i32, i32, i32) {
    %c0_i32 = arith.constant 0 : i32
    %c0_i32_0 = arith.constant 0 : i32
    return %arg0, %arg1, %c0_i32 : i32, i32, i32
  }
  func.func @transform_2(%arg0: i32, %arg1: i32, %arg2: i32) -> (i32, i32, i32) {
    %c0_i32 = arith.constant 0 : i32
    %c0_i32_0 = arith.constant 0 : i32
    return %arg0, %arg1, %c0_i32 : i32, i32, i32
  }
  func.func @transform_3(%arg0: i32, %arg1: i32, %arg2: i32) -> (i32, i32, i32) {
    %c0_i32 = arith.constant 0 : i32
    %c0_i32_0 = arith.constant 0 : i32
    %c0_i32_1 = arith.constant 0 : i32
    return %arg2, %c0_i32, %c0_i32_0 : i32, i32, i32
  }
  func.func @transform_4(%arg0: i32, %arg1: i32, %arg2: i32) -> (i32, i32, i32) {
    %c0_i32 = arith.constant 0 : i32
    %c0_i32_0 = arith.constant 0 : i32
    %c0_i32_1 = arith.constant 0 : i32
    return %arg2, %c0_i32, %c0_i32_0 : i32, i32, i32
  }
  func.func @transform_5(%arg0: i32, %arg1: i32, %arg2: i32) -> (i32, i32, i32) {
    %c0_i32 = arith.constant 0 : i32
    %c0_i32_0 = arith.constant 0 : i32
    %c0_i32_1 = arith.constant 0 : i32
    return %arg2, %c0_i32, %c0_i32_0 : i32, i32, i32
  }
  func.func @transform_6(%arg0: i32, %arg1: i32, %arg2: i32) -> (i32, i32, i32, i32) {
    %c0_i32 = arith.constant 0 : i32
    %c0_i32_0 = arith.constant 0 : i32
    return %arg0, %arg2, %arg1, %c0_i32 : i32, i32, i32, i32
  }
  func.func @transform_7(%arg0: i32, %arg1: i32, %arg2: i32) -> (i32, i32, i32, i32) {
    %c0_i32 = arith.constant 0 : i32
    %c0_i32_0 = arith.constant 0 : i32
    return %arg0, %arg2, %arg1, %c0_i32 : i32, i32, i32, i32
  }
  func.func @transform_8(%arg0: i32, %arg1: i32, %arg2: i32) -> (i32, i32, i32, i32) {
    %c0_i32 = arith.constant 0 : i32
    %c0_i32_0 = arith.constant 0 : i32
    return %arg0, %arg2, %arg1, %c0_i32 : i32, i32, i32, i32
  }
}

</mosaic_0001>

<bundles_post_ra>
// kernel: tpu_custom_call.1
= control target key start
LH: loop header
LB: loop body
LE: loop exit
PB: predicated region body
PF: predicated region fallthrough
CT: control target
= control target key end

     0   :  { %s1641_s0 = inlined_call_operand.vmem [shape: f32[2,8,32], index: 0, kind: input, shape index: {}]   ;;  %s1642_s1 = inlined_call_operand.vmem [shape: f32[2,8,32], index: 1, kind: input, shape index: {}]   ;;  %s1643_s2 = inlined_call_operand.vmem [shape: f32[2,8,32], index: 2, kind: input, shape index: {}]   ;;  %s1644_s3 = inlined_call_operand.vmem [shape: f32[4,32,8], index: 3, kind: input, shape index: {}]   ;;  %s1645_s4 = inlined_call_operand.vmem [shape: f32[4,32,8], index: 4, kind: input, shape index: {}]   ;;  %s1646_s5 = inlined_call_operand.vmem [shape: f32[4,32,8], index: 5, kind: input, shape index: {}]   ;;  %s1647_s6 = inlined_call_operand.hbm [shape: f32[2,4,8,8], index: 6, kind: output, shape index: {0}]   ;;  %s1648_s7 = inlined_call_operand.hbm [shape: f32[2,4,8,8], index: 7, kind: output, shape index: {1}]   ;;  %s1649_s8 = inlined_call_operand.hbm [shape: f32[2,4,8,8], index: 8, kind: output, shape index: {2}]  }
   0x1   :  { %1658 = sst [smem:[#allocation12_spill]] %s1641_s0 }
   0x2   :  { %1659 = sst [smem:[#allocation13_spill]] %s1642_s1 }
   0x3   :  { %14 = vsyncpa [#allocation3], 0 }
   0x4   :  { %16 = vsyncpa [#allocation3 + $0x1], 0 }
   0x5   :  { %17 = vsyncpa [#allocation5], 0 }
   0x6   :  { %19 = vsyncpa [#allocation5 + $0x1], 0  ;;  %s1379_s27 = smov 0   ;;  %s1381_s28 = smov 0  }
   0x7   :  { %s1383_s29 = smov 0   ;;  %s1385_s30 = smov 0  }
   0x8   :  { %s1387_s9 = smov 0   ;;  %s1389_s10 = smov 0  }
   0x9   :  { %s1391_s11 = smov 0   ;;  %s1393_s12 = smov 0  }
   0xa LB: > { %1660 = sst [smem:[#allocation9_spill]] %s1322_s11  ;;  %s1651_s13 = sadd.s32 4294967295, %s1326_s12   ;;  %s1326_s12 = sphi %s1393_s12, %s25_s12   ;;  %s1322_s11 = sphi %s1391_s11, %s1676_s11   ;;  %s1318_s10 = sphi %s1389_s10, %s1681_s10   ;;  %s1314_s9 = sphi %s1387_s9, %s1674_s9   ;;  %s1310_s30 = sphi %s1385_s30, %s1680_s30   ;;  %s1306_s29 = sphi %s1383_s29, %s1679_s29   ;;  %s1302_s28 = sphi %s1381_s28, %s1678_s28   ;;  %s1298_s27 = sphi %s1379_s27, %s1677_s27  }
   0xb   : > { %s1650_s14 = sadd.s32 4294967294, %s1326_s12   ;;  %s37_s15 = sadd.s32 1, %s1318_s10 }
   0xc   : > { %p38_p0 = scmp.ge.s32.totalorder %s37_s15, 4  ;;  %s44_s16 = sadd.s32 1, %s1322_s11 }
   0xd   : > { %p227_p1 = scmp.ne.s32.totalorder %s1306_s29, %s1302_s28  ;;  %p228_p2 = scmp.eq.s32.totalorder %s1651_s13, 7 }
   0xe   : > { %s1683_s15 = smov (%p38_p0, %s37_s15), 0  ;;  %s1685_s16 = smov (!%p38_p0, %s44_s16), %s1322_s11 }
   0xf   : > { %1661 = sst [smem:[#allocation10_spill]] %s1683_s15  ;;  %s211_s17 = ssub.s32 %s1318_s10, %s1683_s15 }
  0x10   : > { %p1432_p3 = por %p228_p2, %p227_p1  ;;  %p46_p4 = scmp.ge.s32.totalorder %s1685_s16, 2 }
  0x11   : > { %p233_p5 = scmp.ne.s32.totalorder %s1302_s28, %s1298_s27  ;;  %p234_p6 = scmp.eq.s32.totalorder %s1650_s14, 7 }
  0x12   : > { %p992_p7 = scmp.ge.s32.totalorder %s1326_s12, 1  ;;  %s1687_s16 = smov (%p46_p4, %s1685_s16), 0 }
  0x13   : > { %1663 = sst [smem:[#allocation11_spill]] %s1687_s16  ;;  %p1443_p8 = por %p234_p6, %p233_p5 }
  0x14   : > { %p366_p9 = scmp.lt.s32.totalorder %s1326_s12, 9  ;;  %s210_s20 = ssub.s32 %s1322_s11, %s1687_s16 }
  0x15   : > { %s217_s21 = sadd.s32 1, %s1306_s29  ;;  %s212_s22 = sor.u32 %s211_s17, %s210_s20 }
  0x16   : > { %p367_p10 = pnand %p992_p7, %p366_p9  ;;  %p215_p11 = scmp.eq.s32.totalorder %s212_s22, 0 }
  0x17   : > { %p462_p12 = scmp.lt.s32.totalorder (!%p367_p10), %s1310_s30, 3  ;;  %p441_p13 = scmp.lt.s32.totalorder (!%p367_p10), %s1314_s9, 1  ;;  %v1328_v0 = vmov (!%p367_p10), 0.0|0.0   ;;  %vm1329_vm0 = vmmov (!%p367_p10), 0   ;;  %v1330_v1 = vmov (!%p367_p10), 0.0   ;;  %vm492_vm1 = vcmask (!%p367_p10), 261120  }
  0x18   : > { %s1452_s23 = scalar_select %p215_p11, %s1306_s29, %s217_s21  }
  0x19   : > { %370 = sbr.rel (%p367_p10) target bundleno = 322 (0x142), region = 44  ;;  %1070 = vmatprep.subr.bf16.mxu0 (!%p367_p10), %v1328_v0  ;;  %1076 = vmatprep.subr.bf16.mxu1 (!%p367_p10), %v1328_v0  ;;  %s1665_s0 = sld [smem:[#allocation12_spill]] (!%p367_p10)  ;;  %vm713_vm2 = vcmask (!%p367_p10), 64512  }
  0x1a   : > { %1045 = vmatprep.mubr.msk.f32.mxu0 (!%p367_p10), %vm1329_vm0, %v1330_v1  ;;  %1056 = vmatprep.mubr.msk.f32.mxu1 (!%p367_p10), %vm1329_vm0, %v1330_v1  ;;  %s1666_s1 = sld [smem:[#allocation13_spill]] (!%p367_p10)  ;;  %s1011_s22 = sshll.u32 (!%p367_p10), %s1314_s9, 2 }
  0x1b   : > { %s740_s17 = sadd.s32 (!%p367_p10), %s1310_s30, %s1011_s22 }
  0x20   : > { %s463_s24 = scalar_select %p462_p12, %s1310_s30, 3 }
  0x21   : > { %s442_s25 = scalar_select %p441_p13, %s1314_s9, 1 }
  0x22   : > { %s1019_s26 = sshll.u32 %s463_s24, 5 }
  0x23   : > { %s466_s21 = scalar_lea.vmem %s1644_s3, %s1019_s26  ;;  %s471_s13 = scalar_lea.vmem %s1645_s4, %s1019_s26 }
  0x24   : > { %v480_v2 = vld [vmem:[%s466_s21] sm:$0xff]  ;;  %v481_v3 = vld [vmem:[%s466_s21 + $0x8] sm:$0xff]  ;;  %v482_v4 = vld [vmem:[%s466_s21 + $0x10] sm:$0xff]  ;;  %s476_s11 = scalar_lea.vmem %s1646_s5, %s1019_s26  ;;  %s1469_s24 = sshll.u32 %s442_s25, 3 }
  0x25   : > { %v1071_v5 = vpack.c.bf16 %v481_v3, %v480_v2  ;;  %v483_v6 = vld [vmem:[%s466_s21 + $0x18] sm:$0xff]  ;;  %v484_v7 = vld [vmem:[%s471_s13] sm:$0xff]  ;;  %v485_v8 = vld [vmem:[%s471_s13 + $0x8] sm:$0xff]  ;;  %s447_s15 = scalar_lea.vmem %s1665_s0, %s1469_s24  ;;  %s454_s26 = scalar_lea.vmem %s1666_s1, %s1469_s24 }
  0x26   : > { %v1077_v9 = vpack.c.bf16 %v485_v8, %v484_v7  ;;  %v1074_v10 = vpack.c.bf16 %v483_v6, %v482_v4  ;;  %v486_v11 = vld [vmem:[%s471_s13 + $0x10] sm:$0xff]  ;;  %v487_v12 = vld [vmem:[%s471_s13 + $0x18] sm:$0xff]  ;;  %v488_v13 = vld [vmem:[%s476_s11] sm:$0xff]  ;;  %s461_s21 = scalar_lea.vmem %s1643_s2, %s1469_s24  ;;  %s1498_s25 = sshll.u32 %s740_s17, 7 }
  0x27   : > { %1072 = vmatpush3.bf16.msra.mxu0 %v1071_v5  ;;  %v489_v14 = vld [vmem:[%s476_s11 + $0x8] sm:$0xff]  ;;  %v1080_v15 = vpack.c.bf16 %v487_v12, %v486_v11  ;;  %v477_v16 = vld [vmem:[%s447_s15] sm:$0xff]  ;;  %v490_v18 = vld [vmem:[%s476_s11 + $0x10] sm:$0xff]  ;;  %s1667_s15 = sadd.s32 4294967295, %s1326_s12   ;;  %s1516_s17 = scalar_lea.hbm %s1647_s6, %s1498_s25 }
  0x28   : > { %1073 = vmatprep.subr.bf16.mxu0 %v1328_v0  ;;  %1078 = vmatpush3.bf16.msra.mxu1 %v1077_v9  ;;  %v1083_v17 = vpack.c.bf16 %v489_v14, %v488_v13  ;;  %v491_v19 = vld [vmem:[%s476_s11 + $0x18] sm:$0xff]  ;;  %v478_v20 = vld [vmem:[%s454_s26] sm:$0xff]  ;;  %s1655_s11 = sand.u32 1, %s1302_s28   ;;  %s1496_s16 = sand.u32 1, %s1667_s15  }
  0x29   : > { %1079 = vmatprep.subr.bf16.mxu1 %v1328_v0  ;;  %v1086_v21 = vpack.c.bf16 %v491_v19, %v490_v18  ;;  %v479_v22 = vld [vmem:[%s461_s21] sm:$0xff]  ;;  %s1491_s14 = sshll.u32 %s1655_s11, 3  ;;  %s1508_s11 = scalar_lea.hbm %s1648_s7, %s1498_s25 }
  0x2a   : > { %s433_s24 = scalar_lea.vmem [#allocation4], %s1491_s14  ;;  %s1656_s9 = scalar_lea.vmem [#allocation2], %s1491_s14 }
  0x2b   : > { %1075 = vmatpush3.bf16.msra.mxu0 %v1074_v10  ;;  %s760_s26 = sshll.u32 %s433_s24, 4  ;;  %s744_s13 = sshll.u32 %s1656_s9, 4  ;;  %s1510_s26 = int_to_ptr.vmem [resolvable:$true] %s760_s26  ;;  %s1518_s13 = int_to_ptr.vmem [resolvable:$true] %s744_s13 }
  0x2c   : > { %1082 = vmatprep.subr.bf16.mxu0 %v1328_v0  ;;  %1081 = vmatpush3.bf16.msra.mxu1 %v1080_v15  ;;  %s1657_s15 = scalar_lea.vmem [#allocation6], %s1491_s14  ;;  %s1172_s9 = scalar_lea.vmem %s1510_s26, 128 }
  0x2d   : > { %s1524_s20 = sshll.u32 %s1657_s15, 4  ;;  %p1173_p0 = scmp.ne.s32.totalorder %s1510_s26, %s1172_s9  ;;  %s1577_s20 = int_to_ptr.vmem [resolvable:$true] %s1524_s20 }
  0x2e   : > { %1046 = vmatmul.mubr.msk.f32.vlgmr.msra.gmra.mrb[0].mxu0 %vm492_vm1, %v477_v16  ;;  %s1331_s0 = smov [#allocation4]  }
  0x2f   : > { %1084 = vmatpush3.bf16.msra.mxu0 %v1083_v17  ;;  %1057 = vmatmul.mubr.msk.f32.vlgmr.msra.gmra.mrb[0].mxu1 %vm492_vm1, %v478_v20  ;;  %p1174_p1 = pnand %p1173_p0, %p1432_p3  ;;  %s1176_s30 = sshll.u32 %s1331_s0, 4  ;;  %s1177_s30 = int_to_ptr.vmem [resolvable:$false] %s1176_s30 }
  0x30   : > { %1085 = vmatprep.subr.bf16.mxu0 %v1328_v0  ;;  %1067 = vmatprep.mubr.msk.f32.mxu0 %vm1329_vm0, %v1330_v1  ;;  %s1178_s22 = scalar_lea.vmem %s1177_s30, 256  ;;  %p1179_p4 = scmp.lt.s32.totalorder %s1510_s26, %s1177_s30 }
  0x31   : > { %p1175_p2 = pneg %p1174_p1  ;;  %p1180_p5 = scmp.lt.s32.totalorder %s1178_s22, %s1172_s9 }
  0x33   : > { %1087 = vmatpush3.bf16.msra.mxu0 %v1086_v21  ;;  %p1181_p6 = por %p1180_p5, %p1179_p4 }
  0x35   : > { %p1182_p7 = pnand %p1181_p6, %p1175_p2 }
  0x36   : > { %1068 = vmatmul.mubr.msk.f32.vlgmr.msra.gmra.mrb[2].mxu0 %vm492_vm1, %v479_v22 }
 0x101   : > { %v562_v23 = vpop.f32.mrb[0].mxu0 }
 0x102   : > { %v566_v24 = vmul.f32 0.35355338, %v562_v23  ;;  %v1047_v25 = vpop.f32.mrb[1].mxu0  ;;  %v636_v26 = vpop.f32.mrb[0].mxu1 }
 0x103   : > { %715 = vst.msk [vmem:[%s433_s24] sm:$0xff] %vm713_vm2, %v636_v26  ;;  %v1058_v27 = vpop.f32.mrb[1].mxu1 }
 0x104   : > { %1185 = shalt.err (!%p1182_p7)
}
 0x105   : > { %s1186_s24 = scalar_lea.hbm %s1508_s11, 128  ;;  %s1190_s0 = scalar_lea.hbm %s1648_s7, 1024 }
 0x106   : > { %p1187_p9 = scmp.ne.s32.totalorder %s1508_s11, %s1186_s24  ;;  %p1191_p12 = scmp.lt.u32.totalorder %s1508_s11, %s1648_s7 }
 0x107   : > { %p1192_p13 = scmp.lt.u32.totalorder %s1190_s0, %s1186_s24  ;;  %p1194_p1 = scmp.lt.u32.totalorder %s1186_s24, %s1508_s11 }
 0x108   : > { %p1188_p10 = pnand %p1187_p9, %p1432_p3 }
 0x109   : > { %p1193_p0 = por %p1192_p13, %p1191_p12 }
 0x10a   : > { %p1189_p11 = pneg %p1188_p10 }
 0x10b   : > { %p1195_p2 = por %p1194_p1, %p1193_p0 }
 0x10d   : > { %p1196_p4 = pnand %p1195_p2, %p1189_p11 }
 0x10f   : > { %1199 = shalt.err (!%p1196_p4)
}
 0x110   : > { %s1668_s9 = scalar_lea.sflag [#allocation5], %s1496_s16  ;;  %s1669_s1 = scalar_lea.vmem [#allocation2], %s1491_s14 }
 0x111   : > { %1089 = dma.vmem_to_hbm [thread:$0]  (%p1432_p3), %s1510_s26, 128, %s1508_s11, %s1668_s9   ;;  %714 = vst.msk [vmem:[%s1669_s1] sm:$0xff] %vm713_vm2, %v566_v24 }
 0x112   : > { %s1670_s15 = sand.u32 1, %s1302_s28   ;;  %s1200_s22 = scalar_lea.vmem %s1518_s13, 128 }
 0x113   : > { %s718_s21 = scalar_lea.sflag [#allocation3], %s1670_s15  ;;  %p1201_p5 = scmp.ne.s32.totalorder %s1518_s13, %s1200_s22 }
 0x114   : > { %s1332_s24 = smov [#allocation2]  }
 0x115   : > { %p1202_p6 = pnand %p1201_p5, %p1432_p3  ;;  %s1204_s0 = sshll.u32 %s1332_s24, 4  ;;  %s1205_s0 = int_to_ptr.vmem [resolvable:$false] %s1204_s0 }
 0x116   : > { %s1206_s30 = scalar_lea.vmem %s1205_s0, 256  ;;  %p1207_p9 = scmp.lt.s32.totalorder %s1518_s13, %s1205_s0 }
 0x117   : > { %p1203_p7 = pneg %p1202_p6  ;;  %p1208_p10 = scmp.lt.s32.totalorder %s1206_s30, %s1200_s22 }
 0x119   : > { %p1209_p11 = por %p1208_p10, %p1207_p9 }
 0x11b   : > { %p1210_p12 = pnand %p1209_p11, %p1203_p7 }
 0x11d   : > { %1213 = shalt.err (!%p1210_p12)
}
 0x11e   : > { %s1214_s11 = scalar_lea.hbm %s1516_s17, 128  ;;  %s1218_s1 = scalar_lea.hbm %s1647_s6, 1024 }
 0x11f   : > { %p1215_p13 = scmp.ne.s32.totalorder %s1516_s17, %s1214_s11  ;;  %p1219_p2 = scmp.lt.u32.totalorder %s1516_s17, %s1647_s6 }
 0x120   : > { %p1220_p4 = scmp.lt.u32.totalorder %s1218_s1, %s1214_s11  ;;  %p1222_p6 = scmp.lt.u32.totalorder %s1214_s11, %s1516_s17 }
 0x121   : > { %p1216_p0 = pnand %p1215_p13, %p1432_p3 }
 0x122   : > { %p1221_p5 = por %p1220_p4, %p1219_p2 }
 0x123   : > { %p1217_p1 = pneg %p1216_p0 }
 0x124   : > { %p1223_p7 = por %p1222_p6, %p1221_p5 }
 0x126   : > { %p1224_p9 = pnand %p1223_p7, %p1217_p1 }
 0x128   : > { %1227 = shalt.err (!%p1224_p9)
}
 0x129   : > { %1088 = dma.vmem_to_hbm [thread:$0]  (%p1432_p3), %s1518_s13, 128, %s1516_s17, %s718_s21   ;;  %v709_v28 = vpop.f32.mrb[2].mxu0 }
 0x12a   : > { %s1583_s30 = scalar_lea.hbm %s1649_s8, %s1498_s25  ;;  %s1671_s11 = scalar_lea.vmem [#allocation6], %s1491_s14  ;;  %v1069_v29 = vpop.f32.mrb[3].mxu0 }
 0x12b   : > { %716 = vst.msk [vmem:[%s1671_s11] sm:$0xff] %vm713_vm2, %v709_v28  ;;  %s1228_s26 = scalar_lea.vmem %s1577_s20, 128  ;;  %s1333_s13 = smov [#allocation6]  }
 0x12c   : > { %p1229_p10 = scmp.ne.s32.totalorder %s1577_s20, %s1228_s26  ;;  %s1232_s17 = sshll.u32 %s1333_s13, 4  ;;  %s1233_s17 = int_to_ptr.vmem [resolvable:$false] %s1232_s17 }
 0x12d   : > { %s1234_s21 = scalar_lea.vmem %s1233_s17, 256  ;;  %p1235_p13 = scmp.lt.s32.totalorder %s1577_s20, %s1233_s17 }
 0x12e   : > { %p1230_p11 = pnand %p1229_p10, %p1432_p3  ;;  %p1236_p0 = scmp.lt.s32.totalorder %s1234_s21, %s1228_s26 }
 0x130   : > { %p1231_p12 = pneg %p1230_p11  ;;  %p1237_p1 = por %p1236_p0, %p1235_p13 }
 0x132   : > { %p1238_p2 = pnand %p1237_p1, %p1231_p12 }
 0x134   : > { %1241 = shalt.err (!%p1238_p2)
}
 0x135   : > { %s1242_s14 = scalar_lea.hbm %s1583_s30, 128  ;;  %s1246_s1 = scalar_lea.hbm %s1649_s8, 1024 }
 0x136   : > { %p1243_p4 = scmp.ne.s32.totalorder %s1583_s30, %s1242_s14  ;;  %p1247_p7 = scmp.lt.u32.totalorder %s1583_s30, %s1649_s8 }
 0x137   : > { %p1248_p9 = scmp.lt.u32.totalorder %s1246_s1, %s1242_s14  ;;  %p1250_p11 = scmp.lt.u32.totalorder %s1242_s14, %s1583_s30 }
 0x138   : > { %p1244_p5 = pnand %p1243_p4, %p1432_p3 }
 0x139   : > { %p1249_p10 = por %p1248_p9, %p1247_p7 }
 0x13a   : > { %p1245_p6 = pneg %p1244_p5 }
 0x13b   : > { %p1251_p12 = por %p1250_p11, %p1249_p10 }
 0x13d   : > { %p1252_p13 = pnand %p1251_p12, %p1245_p6 }
 0x13f   : > { %1255 = shalt.err (!%p1252_p13)
}
 0x140   : > { %s1672_s22 = scalar_lea.sflag [#allocation5], %s1496_s16 }
 0x141   : > { %1090 = dma.vmem_to_hbm [thread:$0]  (%p1432_p3), %s1577_s20, 128, %s1583_s30, %s1672_s22  }
 0x142 PF: > { %p1104_p0 = scmp.ge.s32.totalorder %s1326_s12, 2  ;;  %s788_s0 = sand.u32 1, %s1298_s27  }
 0x143   : > { %s789_s11 = scalar_lea.sflag [#allocation3], %s788_s0 }
 0x144   : > { %p1095_p1 = pnand %p1104_p0, %p1443_p8 }
 0x146   : > { %1289 = dma.done.wait (!%p1095_p1), %s789_s11, 128  }
 0x147   : > { %1291 = vsyncadd (!%p1095_p1), %s789_s11, 4294967168  ;;  %s1673_s26 = sadd.s32 4294967294, %s1326_s12  }
 0x148   : > { %s797_s13 = sand.u32 1, %s1673_s26  }
 0x149   : > { %s798_s18 = scalar_lea.sflag [#allocation5], %s797_s13 }
 0x14a   : > { %1293 = dma.done.wait (!%p1095_p1), %s798_s18, 256  }
 0x14b   : > { %1295 = vsyncadd (!%p1095_p1), %s798_s18, 4294967040  ;;  %s25_s12 = sadd.s32 1, %s1326_s12   ;;  %s1674_s9 = sld [smem:[#allocation9_spill]] }
 0x14c   : > { %p22_p3 = scmp.ge.s32.totalorder %s25_s12, 10   ;;  %s1675_s16 = sld [smem:[#allocation10_spill]] }
 0x14d   : > { %s1676_s11 = sld [smem:[#allocation11_spill]]  ;;  %s1677_s27 = smov %s1302_s28 }
 0x14e   : > { %s1678_s28 = smov %s1306_s29  ;;  %s1679_s29 = smov %s1452_s23 }
 0x14f   : > { %s1680_s30 = smov %s1318_s10  ;;  %24 = sbr.rel (!%p22_p3) target bundleno = 10 (0xa), region = 126 }
 0x152   : > { %s1681_s10 = smov %s1675_s16 }
 0x156   :  { %812 = vsyncpa [#allocation3], 1 }
 0x157   :  { %814 = vsyncpa [#allocation3 + $0x1], 1 }
 0x158   :  { %815 = vsyncpa [#allocation5], 1 }
 0x159   :  { %817 = vsyncpa [#allocation5 + $0x1], 1 }

</bundles_post_ra>
